<compile_context>
chip_gen: v6e
topology: v6e:2x2x1
jax: 0.10.0
libtpu: 0.0.40
codegen_flags: <defaults>
</compile_context>

<pallas_src>
import numpy as np
import jax
import jax.numpy as jnp
from jax.experimental import pallas as pl
from jax.experimental.pallas import tpu as pltpu


def _dma_copy_kernel(x_hbm, o_hbm, sem):
    # Whole-array HBM -> HBM copy; no VMEM, no compute units touched.
    cp = pltpu.make_async_copy(x_hbm, o_hbm, sem)
    cp.start()
    cp.wait()


def _resolve_shape(numel, shape):
    """Resolve a torch-style view shape (may contain a single -1)."""
    if isinstance(shape, int):
        shape = (shape,)
    shape = tuple(int(s) for s in shape)
    if -1 in shape:
        known = 1
        for s in shape:
            if s != -1:
                known *= s
        assert known > 0 and numel % known == 0, "invalid view shape"
        shape = tuple(numel // known if s == -1 else s for s in shape)
    assert int(np.prod(shape)) == numel, "view shape must preserve numel"
    return shape


def _identity_copy(x):
    """Single HBM->HBM DMA copy of `x` (any shape / dtype) via Pallas."""
    numel = int(x.size)
    itemsize = jnp.dtype(x.dtype).itemsize

    # Degenerate cases: nothing to DMA (or rank-0); a kernel buys nothing.
    if numel == 0 or x.ndim == 0:
        return x

    return pl.pallas_call(
        _dma_copy_kernel,
        out_shape=jax.ShapeDtypeStruct(x.shape, x.dtype),
        in_specs=[pl.BlockSpec(memory_space=pl.ANY)],
        out_specs=pl.BlockSpec(memory_space=pl.ANY),
        scratch_shapes=[pltpu.SemaphoreType.DMA(())],
        cost_estimate=pl.CostEstimate(
            flops=0,
            transcendentals=0,
            bytes_accessed=2 * numel * itemsize,
        ),
    )(x)


class View:
    """Pallas/JAX equivalent of the PyTorch View(nn.Module)."""

    def __init__(self, shape):
        # Mirror the PyTorch module: self.shape = (shape,); forward does
        # x.view(*self.shape) which is x.view(shape).
        self.shape = (shape,)

    def __call__(self, x):
        target = _resolve_shape(int(x.size), self.shape[0])
        # TODO(synk): a view is metadata-only; `jnp.reshape(x, target)` alone is
        # the optimal implementation — the HBM->HBM DMA copy below exists only
        # because a Pallas kernel is required.
        out = _identity_copy(x)
        return jnp.reshape(out, target)


if __name__ == "__main__":
    key = jax.random.PRNGKey(0)

    # NCHW input, as a conv feature map would be: (N=2, C=4, H=16, W=16).
    x = jax.random.normal(key, (2, 4, 16, 16), dtype=jnp.float32)

    # Typical wgan_gp usage: flatten spatial/channel dims before a Linear.
    view = View((-1, 4 * 16 * 16))
    y = view(x)
    y = jax.block_until_ready(y)

    ref = jnp.reshape(x, (2, 4 * 16 * 16))
    assert y.shape == (2, 1024), y.shape
    assert y.dtype == x.dtype
    np.testing.assert_array_equal(np.asarray(y), np.asarray(ref))

    # Ragged / non-128-aligned size: the full-array DMA needs no padding.
    x2 = jax.random.normal(jax.random.PRNGKey(0), (3, 5, 7), dtype=jnp.float32)
    y2 = jax.block_until_ready(View((-1,))(x2))
    np.testing.assert_array_equal(np.asarray(y2), np.asarray(jnp.reshape(x2, (-1,))))

    # Empty tensor: bypasses the kernel entirely.
    x3 = jnp.zeros((0, 7), dtype=jnp.float32)
    y3 = jax.block_until_ready(View((-1,))(x3))
    assert y3.shape == (0,), y3.shape

    print("KERNEL_OK")
</pallas_src>

<mosaic_0001>
module attributes {stable_mosaic.version = 11 : i64} {
  func.func @_dma_copy_kernel(%arg0: memref<2x4x16x16xf32, #tpu.memory_space<any>>, %arg1: memref<2x4x16x16xf32, #tpu.memory_space<any>>, %arg2: memref<!tpu.dma_semaphore, #tpu.memory_space<semaphore_mem>>) attributes {dimension_semantics = [], scalar_prefetch = 0 : i64, scratch_operands = 1 : i64, tpu.core_type = #tpu.core_type<tc>} {
    tpu.enqueue_dma source(%arg0 : memref<2x4x16x16xf32, #tpu.memory_space<any>>) target(%arg1 : memref<2x4x16x16xf32, #tpu.memory_space<any>>) target_semaphore(%arg2 : memref<!tpu.dma_semaphore, #tpu.memory_space<semaphore_mem>>)
    tpu.wait_dma2 semaphore(%arg2 : memref<!tpu.dma_semaphore, #tpu.memory_space<semaphore_mem>>) src(%arg0 : memref<2x4x16x16xf32, #tpu.memory_space<any>>) dst(%arg1 : memref<2x4x16x16xf32, #tpu.memory_space<any>>)
    return
  }
}

</mosaic_0001>

<bundles_post_ra>
// kernel: tpu_custom_call.1
= control target key start
LH: loop header
LB: loop body
LE: loop exit
PB: predicated region body
PF: predicated region fallthrough
CT: control target
= control target key end

     0   :  { %s30_s6 = smov [#allocation2]   ;;  %s31_s7 = smov 131072   ;;  %s49_s0 = inlined_call_operand.hbm [shape: f32[2,4,16,16], index: 0, kind: input, shape index: {}]   ;;  %s50_s1 = inlined_call_operand.hbm [shape: f32[2,4,16,16], index: 1, kind: output, shape index: {}]  }
   0x1   :  { %s32_s8 = smov 0  }
   0x2   :  { %12 = dma.general %s49_s0, 2048, %s50_s1, %s30_s6, %s31_s7, [#allocation4], %s32_s8, 0  }
   0x3   :  { %28 = dma.done.wait [#allocation2], 2048 }
   0x4   :  { %29 = vsyncadd [#allocation2], 4294965248 }
   0x5   :  { %18 = vsyncmov [#allocation2] }
   0x8   :  { %s19_s13 = vpop.sfrf %18 }
   0x9   :  { %p24_p0 = scmp.ne.s32.totalorder %s19_s13, 0 }
   0xb   :  { %23 = shalt.err (%p24_p0)  }

</bundles_post_ra>
